<compile_context>
chip_gen: v5e
topology: v5e:2x2
jax: 0.10.0
libtpu: 0.0.40
codegen_flags: <defaults>
</compile_context>

<pallas_src>
import jax
import jax.numpy as jnp
from jax.experimental import pallas as pl
from jax.experimental.pallas import tpu as pltpu


def _fused_mlp_kernel(x_ref, w1_ref, w2_ref, o_ref):
    """y = (x @ w1^T) @ w2^T = x @ (w2 @ w1)^T, fused in one kernel.

    x_ref : (B, K) activations, VMEM
    w1_ref: (J, K) lin1.weight (PyTorch (out, in) layout), SMEM
    w2_ref: (N, J) lin2.weight (PyTorch (out, in) layout), SMEM
    o_ref : (B, N) output, VMEM
    """
    n_out, j_dim = w2_ref.shape      # static (2, 2)
    k_dim = w1_ref.shape[1]          # static (2)

    # Fold the two weights on the scalar unit (free next to the VPU work):
    #   wf_t[k][n] = (w2 @ w1)^T[k, n] = sum_j w2[n, j] * w1[j, k]
    wf_t = [[sum(w2_ref[n, j] * w1_ref[j, k] for j in range(j_dim))
             for n in range(n_out)]
            for k in range(k_dim)]

    # y[:, n] = sum_k x[:, k] * wf_t[k][n]
    # VPU broadcast multiply-adds (scalar splat * column), unrolled at trace
    # time.  No MXU, no transpose.
    for n in range(n_out):
        col = x_ref[:, 0:1] * wf_t[0][n]
        for k in range(1, k_dim):
            col = col + x_ref[:, k:k + 1] * wf_t[k][n]
        o_ref[:, n:n + 1] = col.astype(o_ref.dtype)


def my_model_forward(x, w1, w2):
    """x: (B, 2) f32; w1, w2: (2, 2) f32 in PyTorch (out_features, in_features) layout."""
    B, _ = x.shape
    n_out = w2.shape[0]
    return pl.pallas_call(
        _fused_mlp_kernel,
        out_shape=jax.ShapeDtypeStruct((B, n_out), x.dtype),
        in_specs=[
            pl.BlockSpec(memory_space=pltpu.MemorySpace.VMEM),  # x, whole array
            pl.BlockSpec(memory_space=pltpu.MemorySpace.SMEM),  # lin1.weight (scalars)
            pl.BlockSpec(memory_space=pltpu.MemorySpace.SMEM),  # lin2.weight (scalars)
        ],
        out_specs=pl.BlockSpec(memory_space=pltpu.MemorySpace.VMEM),
    )(x, w1, w2)


if __name__ == "__main__":
    key = jax.random.PRNGKey(0)
    # MyModel: lin1 = Linear(2, 2, bias=False), lin2 = Linear(2, 2, bias=False)
    # reset_parameters fills both weight matrices with 1.0 (deterministic).
    B = 8
    x = jax.random.normal(key, (B, 2), dtype=jnp.float32)
    w1 = jnp.ones((2, 2), dtype=jnp.float32)  # lin1.weight
    w2 = jnp.ones((2, 2), dtype=jnp.float32)  # lin2.weight

    out = my_model_forward(x, w1, w2)
    jax.block_until_ready(out)

    # Reference check (pure JAX, same semantics as the PyTorch forward)
    ref = (x @ w1.T) @ w2.T
    assert out.shape == ref.shape
    assert jnp.allclose(out, ref, atol=1e-5, rtol=1e-5)

    print("KERNEL_OK")
</pallas_src>

<mosaic_0001>
module attributes {stable_mosaic.version = 11 : i64} {
  func.func @_fused_mlp_kernel(%arg0: memref<8x2xf32, #tpu.memory_space<vmem>>, %arg1: memref<2x2xf32, #tpu.memory_space<smem>>, %arg2: memref<2x2xf32, #tpu.memory_space<smem>>, %arg3: memref<8x2xf32, #tpu.memory_space<vmem>>) attributes {dimension_semantics = [], scalar_prefetch = 0 : i64, scratch_operands = 0 : i64, tpu.core_type = #tpu.core_type<tc>} {
    %c0 = arith.constant 0 : index
    %c0_0 = arith.constant 0 : index
    %0 = memref.load %arg2[%c0, %c0_0] : memref<2x2xf32, #tpu.memory_space<smem>>
    %c0_1 = arith.constant 0 : index
    %c0_2 = arith.constant 0 : index
    %1 = memref.load %arg1[%c0_1, %c0_2] : memref<2x2xf32, #tpu.memory_space<smem>>
    %2 = arith.mulf %0, %1 : f32
    %cst = arith.constant 0.000000e+00 : f32
    %3 = arith.addf %cst, %2 : f32
    %c0_3 = arith.constant 0 : index
    %c1 = arith.constant 1 : index
    %4 = memref.load %arg2[%c0_3, %c1] : memref<2x2xf32, #tpu.memory_space<smem>>
    %c1_4 = arith.constant 1 : index
    %c0_5 = arith.constant 0 : index
    %5 = memref.load %arg1[%c1_4, %c0_5] : memref<2x2xf32, #tpu.memory_space<smem>>
    %6 = arith.mulf %4, %5 : f32
    %7 = arith.addf %3, %6 : f32
    %c1_6 = arith.constant 1 : index
    %c0_7 = arith.constant 0 : index
    %8 = memref.load %arg2[%c1_6, %c0_7] : memref<2x2xf32, #tpu.memory_space<smem>>
    %c0_8 = arith.constant 0 : index
    %c0_9 = arith.constant 0 : index
    %9 = memref.load %arg1[%c0_8, %c0_9] : memref<2x2xf32, #tpu.memory_space<smem>>
    %10 = arith.mulf %8, %9 : f32
    %cst_10 = arith.constant 0.000000e+00 : f32
    %11 = arith.addf %cst_10, %10 : f32
    %c1_11 = arith.constant 1 : index
    %c1_12 = arith.constant 1 : index
    %12 = memref.load %arg2[%c1_11, %c1_12] : memref<2x2xf32, #tpu.memory_space<smem>>
    %c1_13 = arith.constant 1 : index
    %c0_14 = arith.constant 0 : index
    %13 = memref.load %arg1[%c1_13, %c0_14] : memref<2x2xf32, #tpu.memory_space<smem>>
    %14 = arith.mulf %12, %13 : f32
    %15 = arith.addf %11, %14 : f32
    %c0_15 = arith.constant 0 : index
    %c0_16 = arith.constant 0 : index
    %16 = memref.load %arg2[%c0_15, %c0_16] : memref<2x2xf32, #tpu.memory_space<smem>>
    %c0_17 = arith.constant 0 : index
    %c1_18 = arith.constant 1 : index
    %17 = memref.load %arg1[%c0_17, %c1_18] : memref<2x2xf32, #tpu.memory_space<smem>>
    %18 = arith.mulf %16, %17 : f32
    %cst_19 = arith.constant 0.000000e+00 : f32
    %19 = arith.addf %cst_19, %18 : f32
    %c0_20 = arith.constant 0 : index
    %c1_21 = arith.constant 1 : index
    %20 = memref.load %arg2[%c0_20, %c1_21] : memref<2x2xf32, #tpu.memory_space<smem>>
    %c1_22 = arith.constant 1 : index
    %c1_23 = arith.constant 1 : index
    %21 = memref.load %arg1[%c1_22, %c1_23] : memref<2x2xf32, #tpu.memory_space<smem>>
    %22 = arith.mulf %20, %21 : f32
    %23 = arith.addf %19, %22 : f32
    %c1_24 = arith.constant 1 : index
    %c0_25 = arith.constant 0 : index
    %24 = memref.load %arg2[%c1_24, %c0_25] : memref<2x2xf32, #tpu.memory_space<smem>>
    %c0_26 = arith.constant 0 : index
    %c1_27 = arith.constant 1 : index
    %25 = memref.load %arg1[%c0_26, %c1_27] : memref<2x2xf32, #tpu.memory_space<smem>>
    %26 = arith.mulf %24, %25 : f32
    %cst_28 = arith.constant 0.000000e+00 : f32
    %27 = arith.addf %cst_28, %26 : f32
    %c1_29 = arith.constant 1 : index
    %c1_30 = arith.constant 1 : index
    %28 = memref.load %arg2[%c1_29, %c1_30] : memref<2x2xf32, #tpu.memory_space<smem>>
    %c1_31 = arith.constant 1 : index
    %c1_32 = arith.constant 1 : index
    %29 = memref.load %arg1[%c1_31, %c1_32] : memref<2x2xf32, #tpu.memory_space<smem>>
    %30 = arith.mulf %28, %29 : f32
    %31 = arith.addf %27, %30 : f32
    %c0_33 = arith.constant 0 : index
    %c0_34 = arith.constant 0 : index
    %32 = vector.load %arg0[%c0_33, %c0_34] : memref<8x2xf32, #tpu.memory_space<vmem>>, vector<8x1xf32>
    %33 = vector.broadcast %7 : f32 to vector<8x1xf32>
    %34 = arith.mulf %32, %33 : vector<8x1xf32>
    %c0_35 = arith.constant 0 : index
    %c1_36 = arith.constant 1 : index
    %35 = vector.load %arg0[%c0_35, %c1_36] : memref<8x2xf32, #tpu.memory_space<vmem>>, vector<8x1xf32>
    %36 = vector.broadcast %23 : f32 to vector<8x1xf32>
    %37 = arith.mulf %35, %36 : vector<8x1xf32>
    %38 = arith.addf %34, %37 : vector<8x1xf32>
    %c0_37 = arith.constant 0 : index
    %c0_38 = arith.constant 0 : index
    %39 = vector.load %arg3[%c0_37, %c0_38] : memref<8x2xf32, #tpu.memory_space<vmem>>, vector<8x1xf32>
    tpu.vector_store %arg3[%c0_37, %c0_38], %38 {strides = array<i32>} : memref<8x2xf32, #tpu.memory_space<vmem>>, vector<8x1xf32>,
    %c0_39 = arith.constant 0 : index
    %c0_40 = arith.constant 0 : index
    %40 = vector.load %arg0[%c0_39, %c0_40] : memref<8x2xf32, #tpu.memory_space<vmem>>, vector<8x1xf32>
    %41 = vector.broadcast %15 : f32 to vector<8x1xf32>
    %42 = arith.mulf %40, %41 : vector<8x1xf32>
    %c0_41 = arith.constant 0 : index
    %c1_42 = arith.constant 1 : index
    %43 = vector.load %arg0[%c0_41, %c1_42] : memref<8x2xf32, #tpu.memory_space<vmem>>, vector<8x1xf32>
    %44 = vector.broadcast %31 : f32 to vector<8x1xf32>
    %45 = arith.mulf %43, %44 : vector<8x1xf32>
    %46 = arith.addf %42, %45 : vector<8x1xf32>
    %c0_43 = arith.constant 0 : index
    %c1_44 = arith.constant 1 : index
    %47 = vector.load %arg3[%c0_43, %c1_44] : memref<8x2xf32, #tpu.memory_space<vmem>>, vector<8x1xf32>
    tpu.vector_store %arg3[%c0_43, %c1_44], %46 {strides = array<i32>} : memref<8x2xf32, #tpu.memory_space<vmem>>, vector<8x1xf32>,
    return
  }
}

</mosaic_0001>

<bundles_post_ra>
// kernel: tpu_custom_call.1
= control target key start
LH: loop header
LB: loop body
LE: loop exit
PB: predicated region body
PF: predicated region fallthrough
CT: control target
= control target key end

     0   :  { %8 = vsyncpa [#allocation3], 0  ;;  %s182_s0 = inlined_call_operand.vmem [shape: f32[8,2], index: 0, kind: input, shape index: {}]   ;;  %s183_s1 = inlined_call_operand.vmem [shape: f32[2,2], index: 1, kind: input, shape index: {}]   ;;  %s184_s2 = inlined_call_operand.vmem [shape: f32[2,2], index: 2, kind: input, shape index: {}]   ;;  %s185_s3 = inlined_call_operand.vmem [shape: f32[8,2], index: 3, kind: output, shape index: {}]  }
   0x1   :  { %s17_s14 = sshll.u32 %s183_s1, 4  ;;  %s18_s14 = int_to_ptr.vmem [resolvable:$true] %s17_s14 }
   0x2   :  { %9 = vsyncpa [#allocation5], 0  ;;  %s26_s17 = sshll.u32 %s184_s2, 4  ;;  %s135_s18 = smov [#allocation2]   ;;  %s27_s17 = int_to_ptr.vmem [resolvable:$true] %s26_s17 }
   0x3   :  { %20 = dma.vmem_to_smem %s18_s14, 32, %s135_s18, [#allocation3]  }
   0x4   :  { %s136_s19 = smov [#allocation4]  }
   0x5   :  { %29 = dma.vmem_to_smem %s27_s17, 32, %s136_s19, [#allocation5]  }
   0x6   :  { %131 = dma.done.wait [#allocation3], 32  }
   0x7   :  { %132 = vsyncadd [#allocation3], 4294967264 }
   0x8   :  { %133 = dma.done.wait [#allocation5], 32  }
   0x9   :  { %134 = vsyncadd [#allocation5], 4294967264 }
   0xa   :  { %38 = sfence }
   0xb   :  { %s99_s20 = sld [smem:[#allocation4 + $0x80]]  ;;  %v75_v0 = vld [vmem:[%s182_s0] sm:$0xff]  ;;  %s137_s11 = smov 127   ;;  %vm73_vm0 = vcmask 7168   ;;  %vm89_vm1 = vcmask 15368  }
   0xc   :  { %s100_s21 = sld [smem:[#allocation4 + $0x81]]  ;;  %s138_s12 = smov 1  }
   0xd   :  { %s101_s22 = sld [smem:[#allocation2 + $0x1]] }
   0xe   :  { %s102_s1 = sld [smem:[#allocation2 + $0x81]] }
   0xf   :  { %s165_s23 = sld [smem:[#allocation2]] }
  0x10   :  { %s167_s24 = sld [smem:[#allocation2 + $0x80]] }
  0x11   :  { %s39_s2 = sld [smem:[#allocation4]] }
  0x12   :  { %s97_s25 = sld [smem:[#allocation4 + $0x1]] }
  0x13   :  { %s59_s26 = smul.f32 %s101_s22, %s99_s20 }
  0x14   :  { %s61_s27 = smul.f32 %s102_s1, %s100_s21 }
  0x15   :  { %s48_s28 = smul.f32 %s99_s20, %s165_s23 }
  0x16   :  { %s62_s29 = sadd.f32 %s61_s27, %s59_s26  ;;  %s51_s5 = smul.f32 %s100_s21, %s167_s24 }
  0x17   :  { %s54_s6 = smul.f32 %s101_s22, %s39_s2 }
  0x18   :  { %v78_v1 = vstv %s62_s29  ;;  %s52_s7 = sadd.f32 %s51_s5, %s48_s28  ;;  %s57_s8 = smul.f32 %s102_s1, %s97_s25 }
  0x19   :  { %v79_v2 = vmul.f32 %v78_v1, %v75_v0  ;;  %s45_s9 = smul.f32 %s167_s24, %s97_s25 }
  0x1a   :  { %s58_s10 = sadd.f32 %s57_s8, %s54_s6  ;;  %v76_v5 = vstv %s52_s7  ;;  %s41_s0 = smul.f32 %s165_s23, %s39_s2 }
  0x1b   :  { %81 = vrot.lane.b32.xlu0 %v79_v2, %s137_s11  ;;  %v77_v6 = vmul.f32 %v76_v5, %v75_v0 }
  0x1c   :  { %v66_v3 = vstv %s58_s10  ;;  %s46_s13 = sadd.f32 %s45_s9, %s41_s0 }
  0x1d   :  { %v67_v4 = vmul.f32 %v75_v0, %v66_v3 }
  0x1e   :  { %v64_v9 = vstv %s46_s13 }
  0x1f   :  { %v65_v10 = vmul.f32 %v75_v0, %v64_v9 }
  0x23   :  { %69 = vrot.lane.b32.xlu0 %v67_v4, %s137_s11 }
  0x8d   :  { %v82_v7 = vpop.permute.xlu0 %81 }
  0x8e   :  { %v84_v8 = vadd.f32 %v82_v7, %v77_v6 }
  0x90   :  { %86 = vrot.lane.b32.xlu1 %v84_v8, %s138_s12 }
  0x95   :  { %v70_v11 = vpop.permute.xlu0 %69 }
  0x96   :  { %v72_v12 = vadd.f32 %v70_v11, %v65_v10 }
  0x98   :  { %74 = vst.msk [vmem:[%s185_s3] sm:$0xff] %vm73_vm0, %v72_v12 }
 0x102   :  { %v87_v13 = vpop.permute.xlu1 %86 }
 0x103   :  { %90 = vst.msk [vmem:[%s185_s3] sm:$0xff] %vm89_vm1, %v87_v13 }
 0x104   :  { %95 = vsyncpa [#allocation3], 1 }
 0x105   :  { %96 = vsyncpa [#allocation5], 1 }

</bundles_post_ra>
